<compile_context>
chip_gen: v6e
topology: v6e:2x2x1
jax: 0.10.0
libtpu: 0.0.40
codegen_flags: <defaults>
</compile_context>

<pallas_src>
import math

import jax
import jax.numpy as jnp
from jax.experimental import pallas as pl
from jax.experimental.pallas import tpu as pltpu


def _mlp_kernel(x_ref, peb_ref, wf_ref, w2_ref, b2_ref, o_ref):
    """One tile of packed rows (P logical positions per physical row).

    x_ref  : (tm, P*Din) f32   raw (un-padded) activations
    peb_ref: (tm, P*D)   f32   per-row bias = pe @ W1^T + b1 (pad + PE folded away)
    wf_ref : (P*Din, P*D) bf16 block-diag of (W1^T with replication pad folded in)
    w2_ref : (P*D, P*D)  bf16  block-diag of W2^T
    b2_ref : (1, P*D)    f32   b2 tiled P times
    o_ref  : (tm, P*D)   f32
    """
    xb = x_ref[...].astype(jnp.bfloat16)
    h1 = jnp.dot(xb, wf_ref[...], preferred_element_type=jnp.float32)
    h1 = jnp.maximum(h1 + peb_ref[...], 0.0).astype(jnp.bfloat16)
    h2 = jnp.dot(h1, w2_ref[...], preferred_element_type=jnp.float32)
    h2 = h2 + b2_ref[...]
    o_ref[...] = jnp.tanh(h2.astype(jnp.bfloat16)).astype(jnp.float32)


@jax.jit
def my_function_forward(x, pe, w1, b1, w2, b2):
    """x: (B, S, d_model-2) f32 (or bf16).  Returns (B, S, d_model) f32."""
    B, S, Din = x.shape
    D = pe.shape[1]
    assert Din == D - 2, "input feature dim must be d_model - 2 (pad adds 2)"
    assert S <= pe.shape[0], "sequence length exceeds max_len of the PE table"
    assert D >= 4

    f32, bf16 = jnp.float32, jnp.bfloat16

    # --- fold replication_pad1d into W1 (exact in real arithmetic) ------------
    w1t = jnp.asarray(w1, f32).T                                   # (D, D) [in, out]
    wf = jnp.concatenate(
        [w1t[0:1] + w1t[1:2],                                      # left pad column
         w1t[2:D - 2],
         w1t[D - 2:D - 1] + w1t[D - 1:D]],                         # right pad column
        axis=0)                                                    # (Din, D) f32

    # --- fold the (broadcast) positional encoding into a per-position bias ----
    peb = jnp.dot(pe[:S].astype(bf16), w1t.astype(bf16),
                  preferred_element_type=f32) + jnp.asarray(b1, f32)   # (S, D) f32

    w2t = jnp.asarray(w2, f32).T                                   # (D, D)
    b2r = jnp.asarray(b2, f32).reshape(1, D)

    # --- lane-dense row packing: P positions per physical row -----------------
    # Free row-major reshapes of x / peb / out; only the VMEM-resident weights
    # grow (block-diagonal).  For D=32, P=4 -> 128-lane (unmasked) stores.
    P = 1
    if D < 128:
        for cand in (4, 2):
            if S % cand == 0:
                P = cand
                break

    Sp = S // P                      # packed rows per sequence
    Np = (B * S) // P                # total packed rows
    xw = P * Din                     # packed input row width
    ow = P * D                       # packed output row width

    if P > 1:
        wf_k = jax.scipy.linalg.block_diag(*([wf] * P)).astype(bf16)    # (xw, ow)
        w2_k = jax.scipy.linalg.block_diag(*([w2t] * P)).astype(bf16)   # (ow, ow)
        b2_k = jnp.tile(b2r, (1, P))                                    # (1, ow)
        peb_k = peb.reshape(Sp, ow)                                     # free reshape
    else:
        wf_k = wf.astype(bf16)
        w2_k = w2t.astype(bf16)
        b2_k = b2r
        peb_k = peb

    # --- tile sizing: amortize ~0.35us/step, stay inside v5e scoped VMEM ------
    x_row_bytes = xw * x.dtype.itemsize
    row_bytes = x_row_bytes + 2 * ow * 4          # x + peb + out per packed row
    VMEM_BUDGET = 10 * (1 << 20)                  # conservative on every generation
    TARGET_X_BYTES = 4 * (1 << 20)                # ~1-4 MB of x per grid step
    cap_rows = max(8, (VMEM_BUDGET // 2) // row_bytes)        # /2: double-buffered
    tgt_rows = max(8, TARGET_X_BYTES // x_row_bytes)
    tile_rows = min(cap_rows, tgt_rows)

    if Sp <= tile_rows:
        # Short sequences: each tile = k whole sequences, so the per-position
        # bias block is position-aligned and VMEM-resident (constant index_map).
        g = 8 // math.gcd(Sp, 8)                  # smallest k with k*Sp % 8 == 0
        k = max(1, tile_rows // Sp)
        k = max(g, (k // g) * g)
        k = min(k, B)
        # v7x has 2 TensorCores; splitting into >=2 grid steps only pays when
        # each step still carries >= ~1 MiB of x traffic.
        if k == B and B > g:
            half_k = max(g, ((B // 2) // g) * g)
            if half_k < B and half_k * Sp * x_row_bytes >= (1 << 20):
                k = half_k
        tm = k * Sp                               # multiple of 8, or == Np (full)

        x2 = x.reshape(Np, xw)                    # free row-major view
        peb_t = jnp.tile(peb_k, (k, 1))           # (tm, ow), tiny, fetched once

        out = pl.pallas_call(
            _mlp_kernel,
            out_shape=jax.ShapeDtypeStruct((Np, ow), f32),
            grid=(pl.cdiv(B, k),),                # masked tail block if B % k
            in_specs=[
                pl.BlockSpec((tm, xw), lambda i: (i, 0)),     # activations
                pl.BlockSpec((tm, ow), lambda i: (0, 0)),     # PE bias (resident)
                pl.BlockSpec((xw, ow), lambda i: (0, 0)),     # folded W1 (resident)
                pl.BlockSpec((ow, ow), lambda i: (0, 0)),     # W2^T (resident)
                pl.BlockSpec((1, ow), lambda i: (0, 0)),      # b2 (resident)
            ],
            out_specs=pl.BlockSpec((tm, ow), lambda i: (i, 0)),
            compiler_params=pltpu.CompilerParams(
                dimension_semantics=("parallel",)),
        )(x2, peb_t, wf_k, w2_k, b2_k)
        return out.reshape(B, S, D)

    # Long sequences: 2-D grid (batch, seq-tile); PE bias indexed by the seq tile.
    ts = max(8, (tile_rows // 8) * 8)
    x3 = x.reshape(B, Sp, xw)                     # free row-major view
    out = pl.pallas_call(
        _mlp_kernel,
        out_shape=jax.ShapeDtypeStruct((B, Sp, ow), f32),
        grid=(B, pl.cdiv(Sp, ts)),                # masked tail block if Sp % ts
        in_specs=[
            pl.BlockSpec((None, ts, xw), lambda b, s: (b, s, 0)),
            pl.BlockSpec((ts, ow), lambda b, s: (s, 0)),
            pl.BlockSpec((xw, ow), lambda b, s: (0, 0)),
            pl.BlockSpec((ow, ow), lambda b, s: (0, 0)),
            pl.BlockSpec((1, ow), lambda b, s: (0, 0)),
        ],
        out_specs=pl.BlockSpec((None, ts, ow), lambda b, s: (b, s, 0)),
        compiler_params=pltpu.CompilerParams(
            dimension_semantics=("parallel", "parallel")),
    )(x3, peb_k, wf_k, w2_k, b2_k)
    return out.reshape(B, S, D)


def _reference(x, pe, w1, b1, w2, b2):
    """Pure-JAX reference mirroring the torch forward."""
    S = x.shape[1]
    x_p = jnp.concatenate([x[..., :1], x, x[..., -1:]], axis=-1)
    h = (x_p + pe[:S][None]).astype(jnp.bfloat16)
    h1 = jnp.dot(h, w1.T.astype(jnp.bfloat16),
                 preferred_element_type=jnp.float32) + b1
    h1 = jnp.maximum(h1, 0.0).astype(jnp.bfloat16)
    h2 = jnp.dot(h1, w2.T.astype(jnp.bfloat16),
                 preferred_element_type=jnp.float32) + b2
    return jnp.tanh(h2.astype(jnp.bfloat16)).astype(jnp.float32)


if __name__ == "__main__":
    # small shapes consistent with the module: batch=2, seq=8, d_model=32
    # (replication_pad1d(.,(1,1)) means the input last dim is d_model-2 = 30)
    B, S, D = 2, 8, 32
    MAX_LEN = 512

    key = jax.random.PRNGKey(0)
    k_x, k_pe, k_w1, k_b1, k_w2, k_b2 = jax.random.split(key, 6)

    x = jax.random.normal(k_x, (B, S, D - 2), dtype=jnp.float32)

    # deterministic parameter init (shapes from the module's __init__)
    pe = jax.random.normal(k_pe, (MAX_LEN, D), dtype=jnp.float32)     # torch.randn
    bound = 1.0 / math.sqrt(D)
    w1 = jax.random.uniform(k_w1, (D, D), jnp.float32, -bound, bound)
    b1 = jax.random.uniform(k_b1, (D,), jnp.float32, -bound, bound)
    w2 = jax.random.uniform(k_w2, (D, D), jnp.float32, -bound, bound)
    b2 = jax.random.uniform(k_b2, (D,), jnp.float32, -bound, bound)

    out = jax.block_until_ready(my_function_forward(x, pe, w1, b1, w2, b2))
    ref = _reference(x, pe, w1, b1, w2, b2)

    assert out.shape == (B, S, D) and out.dtype == jnp.float32
    err = float(jnp.max(jnp.abs(out - ref)))
    assert err < 5e-2, f"mismatch vs reference: max abs err = {err}"

    print("KERNEL_OK")
</pallas_src>

<mosaic_0001>
module attributes {stable_mosaic.version = 11 : i64} {
  func.func @_mlp_kernel(%arg0: i32, %arg1: memref<4x120xf32, #tpu.memory_space<vmem>>, %arg2: memref<4x128xf32, #tpu.memory_space<vmem>>, %arg3: memref<120x128xbf16, #tpu.memory_space<vmem>>, %arg4: memref<128x128xbf16, #tpu.memory_space<vmem>>, %arg5: memref<1x128xf32, #tpu.memory_space<vmem>>, %arg6: memref<4x128xf32, #tpu.memory_space<vmem>>) attributes {dimension_semantics = [#tpu.dimension_semantics<parallel>], iteration_bounds = array<i64: 1>, scalar_prefetch = 0 : i64, scratch_operands = 0 : i64, tpu.core_type = #tpu.core_type<tc>, window_params = [{transform_indices = @transform_0, window_bounds = array<i64: 4, 120>}, {pipeline_mode = #tpu.pipeline_mode<synchronous>, transform_indices = @transform_1, window_bounds = array<i64: 4, 128>}, {pipeline_mode = #tpu.pipeline_mode<synchronous>, transform_indices = @transform_2, window_bounds = array<i64: 120, 128>}, {pipeline_mode = #tpu.pipeline_mode<synchronous>, transform_indices = @transform_3, window_bounds = array<i64: 128, 128>}, {pipeline_mode = #tpu.pipeline_mode<synchronous>, transform_indices = @transform_4, window_bounds = array<i64: 1, 128>}, {transform_indices = @transform_5, window_bounds = array<i64: 4, 128>}]} {
    %c0 = arith.constant 0 : index
    %c0_0 = arith.constant 0 : index
    %0 = vector.load %arg1[%c0, %c0_0] : memref<4x120xf32, #tpu.memory_space<vmem>>, vector<4x120xf32>
    %1 = arith.truncf %0 : vector<4x120xf32> to vector<4x120xbf16>
    %c0_1 = arith.constant 0 : index
    %c0_2 = arith.constant 0 : index
    %2 = vector.load %arg3[%c0_1, %c0_2] : memref<120x128xbf16, #tpu.memory_space<vmem>>, vector<120x128xbf16>
    %cst = arith.constant dense<0.000000e+00> : vector<4x128xf32>
    %3 = tpu.matmul %1, %2, %cst {dimension_numbers = #tpu.dot_dimension_numbers<[1], [0], [0], [1], [0, 0, 1, 1], [], []>} : vector<4x120xbf16>, vector<120x128xbf16>, vector<4x128xf32> -> vector<4x128xf32>
    %c0_3 = arith.constant 0 : index
    %c0_4 = arith.constant 0 : index
    %4 = vector.load %arg2[%c0_3, %c0_4] : memref<4x128xf32, #tpu.memory_space<vmem>>, vector<4x128xf32>
    %5 = arith.addf %3, %4 : vector<4x128xf32>
    %cst_5 = arith.constant 0.000000e+00 : f32
    %6 = vector.broadcast %cst_5 : f32 to vector<4x128xf32>
    %7 = arith.maximumf %5, %6 : vector<4x128xf32>
    %8 = arith.truncf %7 : vector<4x128xf32> to vector<4x128xbf16>
    %c0_6 = arith.constant 0 : index
    %c0_7 = arith.constant 0 : index
    %9 = vector.load %arg4[%c0_6, %c0_7] : memref<128x128xbf16, #tpu.memory_space<vmem>>, vector<128x128xbf16>
    %cst_8 = arith.constant dense<0.000000e+00> : vector<4x128xf32>
    %10 = tpu.matmul %8, %9, %cst_8 {dimension_numbers = #tpu.dot_dimension_numbers<[1], [0], [0], [1], [0, 0, 1, 1], [], []>} : vector<4x128xbf16>, vector<128x128xbf16>, vector<4x128xf32> -> vector<4x128xf32>
    %c0_9 = arith.constant 0 : index
    %c0_10 = arith.constant 0 : index
    %11 = vector.load %arg5[%c0_9, %c0_10] : memref<1x128xf32, #tpu.memory_space<vmem>>, vector<1x128xf32>
    %12 = vector.broadcast %11 : vector<1x128xf32> to vector<4x128xf32>
    %13 = arith.addf %10, %12 : vector<4x128xf32>
    %14 = arith.truncf %13 : vector<4x128xf32> to vector<4x128xbf16>
    %15 = math.tanh %14 : vector<4x128xbf16>
    %16 = arith.extf %15 : vector<4x128xbf16> to vector<4x128xf32>
    %c0_11 = arith.constant 0 : index
    %c0_12 = arith.constant 0 : index
    %17 = vector.load %arg6[%c0_11, %c0_12] : memref<4x128xf32, #tpu.memory_space<vmem>>, vector<4x128xf32>
    tpu.vector_store %arg6[%c0_11, %c0_12], %16 {strides = array<i32>} : memref<4x128xf32, #tpu.memory_space<vmem>>, vector<4x128xf32>,
    return
  }
  func.func @transform_0(%arg0: i32) -> (i32, i32) {
    %c0_i32 = arith.constant 0 : i32
    %c0_i32_0 = arith.constant 0 : i32
    return %arg0, %c0_i32 : i32, i32
  }
  func.func @transform_1(%arg0: i32) -> (i32, i32) {
    %c0_i32 = arith.constant 0 : i32
    %c0_i32_0 = arith.constant 0 : i32
    %c0_i32_1 = arith.constant 0 : i32
    return %c0_i32, %c0_i32_0 : i32, i32
  }
  func.func @transform_2(%arg0: i32) -> (i32, i32) {
    %c0_i32 = arith.constant 0 : i32
    %c0_i32_0 = arith.constant 0 : i32
    %c0_i32_1 = arith.constant 0 : i32
    return %c0_i32, %c0_i32_0 : i32, i32
  }
  func.func @transform_3(%arg0: i32) -> (i32, i32) {
    %c0_i32 = arith.constant 0 : i32
    %c0_i32_0 = arith.constant 0 : i32
    %c0_i32_1 = arith.constant 0 : i32
    return %c0_i32, %c0_i32_0 : i32, i32
  }
  func.func @transform_4(%arg0: i32) -> (i32, i32) {
    %c0_i32 = arith.constant 0 : i32
    %c0_i32_0 = arith.constant 0 : i32
    %c0_i32_1 = arith.constant 0 : i32
    return %c0_i32, %c0_i32_0 : i32, i32
  }
  func.func @transform_5(%arg0: i32) -> (i32, i32) {
    %c0_i32 = arith.constant 0 : i32
    %c0_i32_0 = arith.constant 0 : i32
    return %arg0, %c0_i32 : i32, i32
  }
}

</mosaic_0001>

<bundles_post_ra>
// kernel: my_function_forward.1
= control target key start
LH: loop header
LB: loop body
LE: loop exit
PB: predicated region body
PF: predicated region fallthrough
CT: control target
= control target key end

     0   :  { %vm88_vm0 = vcmask 1043456   ;;  %v349_v0 = vmov 0.0   ;;  %vm350_vm1 = vmmov 0   ;;  %vm84_vm2 = vcmask 982016   ;;  %s441_s2 = inlined_call_operand.vmem [shape: bf16[120,128], index: 2, kind: input, shape index: {}]   ;;  %s442_s3 = inlined_call_operand.vmem [shape: bf16[128,128], index: 3, kind: input, shape index: {}]   ;;  %s443_s0 = inlined_call_operand.vmem [shape: f32[4,120], index: 0, kind: input, shape index: {}]   ;;  %s444_s1 = inlined_call_operand.vmem [shape: f32[4,128], index: 1, kind: input, shape index: {}]   ;;  %s445_s4 = inlined_call_operand.vmem [shape: f32[1,128], index: 4, kind: input, shape index: {}]   ;;  %s446_s5 = inlined_call_operand.vmem [shape: f32[4,128], index: 5, kind: output, shape index: {}]  }
   0x1   :  { %289 = vmatprep.subr.bf16.mxu0 %v349_v0  ;;  %v331_v1 = vld [vmem:[%s441_s2 + $0x38] ss:$0 sps:$4 sm:$0xff]   ;;  %305 = vmatprep.mubr.msk.bf16.mxu0 %vm350_vm1, %v349_v0  ;;  %v332_v3 = vld [vmem:[%s441_s2 + $0x30] sm:$0xff]   ;;  %v333_v4 = vld [vmem:[%s441_s2 + $0x28] sm:$0xff]  }
   0x2   :  { %309 = vmatprep.subr.bf16.mxu1 %v349_v0  ;;  %325 = vmatprep.mubr.msk.bf16.mxu1 %vm350_vm1, %v349_v0  ;;  %v90_v2 = vsel %vm88_vm0, %v331_v1, 0  ;;  %v339_v5 = vld [vmem:[%s442_s3 + $0x38] sm:$0xff]   ;;  %v340_v6 = vld [vmem:[%s442_s3 + $0x30] sm:$0xff]   ;;  %v334_v7 = vld [vmem:[%s441_s2 + $0x20] sm:$0xff]  }
   0x3   :  { %290 = vmatpush3.bf16.msra.mxu0 %v90_v2  ;;  %310 = vmatpush3.bf16.msra.mxu1 %v339_v5  ;;  %v341_v8 = vld [vmem:[%s442_s3 + $0x28] sm:$0xff]   ;;  %v335_v9 = vld [vmem:[%s441_s2 + $0x18] sm:$0xff]   ;;  %v342_v10 = vld [vmem:[%s442_s3 + $0x20] sm:$0xff]  }
   0x4   :  { %291 = vmatprep.subr.bf16.mxu0 %v349_v0  ;;  %311 = vmatprep.subr.bf16.mxu1 %v349_v0  ;;  %v336_v11 = vld [vmem:[%s441_s2 + $0x10] sm:$0xff]   ;;  %v343_v12 = vld [vmem:[%s442_s3 + $0x18] sm:$0xff]   ;;  %v337_v13 = vld [vmem:[%s441_s2 + $0x8] sm:$0xff]  }
   0x5   :  { %v344_v14 = vld [vmem:[%s442_s3 + $0x10] sm:$0xff]   ;;  %v338_v15 = vld [vmem:[%s441_s2] sm:$0xff]   ;;  %v345_v18 = vld [vmem:[%s442_s3 + $0x8] sm:$0xff]  }
   0x6   :  { %v21_v16 = vld [vmem:[%s443_s0] sm:$0xf] }
   0x7   :  { %292 = vmatpush3.bf16.msra.mxu0 %v332_v3  ;;  %312 = vmatpush3.bf16.msra.mxu1 %v340_v6  ;;  %v22_v17 = vpack.c.bf16 %v21_v16, %v21_v16  ;;  %v346_v19 = vld [vmem:[%s442_s3] sm:$0xff]  }
   0x8   :  { %293 = vmatprep.subr.bf16.mxu0 %v349_v0  ;;  %313 = vmatprep.subr.bf16.mxu1 %v349_v0  ;;  %v38_v20 = vld [vmem:[%s444_s1] sm:$0xf] }
   0x9   :  { %v262_v28 = vld [vmem:[%s445_s4] ss:$0 sm:$0xff] }
   0xb   :  { %294 = vmatpush3.bf16.msra.mxu0 %v333_v4  ;;  %314 = vmatpush3.bf16.msra.mxu1 %v341_v8 }
   0xc   :  { %295 = vmatprep.subr.bf16.mxu0 %v349_v0  ;;  %315 = vmatprep.subr.bf16.mxu1 %v349_v0 }
   0xf   :  { %296 = vmatpush3.bf16.msra.mxu0 %v334_v7  ;;  %316 = vmatpush3.bf16.msra.mxu1 %v342_v10 }
  0x10   :  { %297 = vmatprep.subr.bf16.mxu0 %v349_v0  ;;  %317 = vmatprep.subr.bf16.mxu1 %v349_v0 }
  0x13   :  { %298 = vmatpush3.bf16.msra.mxu0 %v335_v9  ;;  %318 = vmatpush3.bf16.msra.mxu1 %v343_v12 }
  0x14   :  { %299 = vmatprep.subr.bf16.mxu0 %v349_v0  ;;  %319 = vmatprep.subr.bf16.mxu1 %v349_v0 }
  0x17   :  { %300 = vmatpush3.bf16.msra.mxu0 %v336_v11  ;;  %320 = vmatpush3.bf16.msra.mxu1 %v344_v14 }
  0x18   :  { %301 = vmatprep.subr.bf16.mxu0 %v349_v0  ;;  %321 = vmatprep.subr.bf16.mxu1 %v349_v0 }
  0x1b   :  { %302 = vmatpush3.bf16.msra.mxu0 %v337_v13  ;;  %322 = vmatpush3.bf16.msra.mxu1 %v345_v18 }
  0x1c   :  { %303 = vmatprep.subr.bf16.mxu0 %v349_v0  ;;  %323 = vmatprep.subr.bf16.mxu1 %v349_v0 }
  0x1f   :  { %304 = vmatpush3.bf16.msra.mxu0 %v338_v15  ;;  %324 = vmatpush3.bf16.msra.mxu1 %v346_v19 }
  0x22   :  { %306 = vmatmul.mubr.msk.bf16.vlgmr.msra.gmra.mxu0 %vm84_vm2, %v22_v17 }
  0xe2   :  { %v126_v21 = vpop.f32.mrf.mxu0 }
  0xe3   :  { %v127_v22 = vadd.f32 %v126_v21, %v38_v20 }
  0xe4   :  { %v307_v23 = vpop.f32.mrf.mxu0 }
  0xe5   :  { %v132_v24 = vmax.f32 %v127_v22, 0.0 }
  0xe6   :  { %v129_v25 = vpop.f32.mrf.mxu0 }
  0xe7   :  { %v133_v26 = vpack.c.bf16 %v132_v24, %v132_v24 }
  0xe8   :  { %v308_v27 = vpop.f32.mrf.mxu0 }
  0xe9   :  { %326 = vmatmul.mubr.bf16.vlgmr.msra.gmra.mxu1 %v133_v26 }
 0x1a9   :  { %v239_v29 = vpop.f32.mrf.mxu1 }
 0x1aa   :  { %v240_v30 = vadd.f32 %v262_v28, %v239_v29 }
 0x1ab   :  { %v327_v31 = vpop.f32.mrf.mxu1 }
 0x1ac   :  { %v245_v32 = vpack.c.bf16 %v240_v30, %v240_v30 }
 0x1ad   :  { %v242_v33 = vpop.f32.mrf.mxu1 }
 0x1ae   :  { %347 = vtanh.bf16 %v245_v32 }
 0x1af   :  { %v328_v34 = vpop.f32.mrf.mxu1 }
 0x1bc   :  { %v348_v35 = vpop.eup %347 }
 0x1bd   :  { %v247_v36 = vunpack.c.l.bf16 %v348_v35 }
 0x1bf   :  { %248 = vst [vmem:[%s446_s5] sm:$0xf] %v247_v36 }

</bundles_post_ra>
